<compile_context>
chip_gen: v6e
topology: v6e:2x2x1
jax: 0.10.0
libtpu: 0.0.40
codegen_flags: <defaults>
</compile_context>

<pallas_src>
import functools

import jax
import jax.numpy as jnp
from jax.experimental import pallas as pl
from jax.experimental.pallas import tpu as pltpu

# torch.finfo(torch.float32).eps — plain Python float so it lowers as a literal.
_EPS = 1.1920929e-07


def _round_up(x, m):
    return (x + m - 1) // m * m


def _device_profile():
    """Returns (is_pre_v6_chip, physical_vmem_bytes).

    Pre-v6 chips have no bf16 EUP path, so silu stays f32 there.  VMEM
    capacity drives the tile budget (v5e/v6e: 128 MiB, v7x: 64 MiB)."""
    kind = ""
    try:
        kind = jax.devices()[0].device_kind.lower()
    except Exception:
        pass
    old_gen = any(t in kind for t in ("v2", "v3", "v4", "v5"))
    try:
        vmem_cap = int(pltpu.get_tpu_info().vmem_capacity_bytes)
    except Exception:
        vmem_cap = 64 * 1024 * 1024  # conservative (v7x-sized) fallback
    return old_gen, vmem_cap


def _choose_tile(bt, max_tile):
    """Pick a row tile (multiple of 16 for bf16 sublane packing).

    Prefer a tile that divides `bt` exactly so the wrapper never needs a
    jnp.pad (an extra full HBM read+write of the largest tensors); otherwise
    fall back to a balanced tile with minimal padding."""
    max_tile = max(16, min(max_tile, _round_up(bt, 16)) // 16 * 16)
    best_div = 0
    for t in range(16, max_tile + 1, 16):
        if bt % t == 0:
            best_div = t
    if best_div >= min(max_tile, 256) or best_div == bt:
        return best_div, bt
    # TODO(synk): a masked ragged last block would avoid even this small pad.
    n_blocks = -(-bt // max_tile)
    tile = _round_up(-(-bt // n_blocks), 16)
    return tile, n_blocks * tile


def _confounder_posterior_kernel(
    code_ref, xsum_ref, noise_ref,
    w_ref, b_ref,                       # fully fused hypernet params
    u_ref, mu_ref, lv_ref,
    *, hidden_dim, out_dim, silu_bf16,
):
    H, O = hidden_dim, out_dim
    ce = code_ref[...]                                   # (tile, C) bf16
    x_sum = xsum_ref[...]                                # (tile, 1) f32

    # Single fused MXU matmul.  Lane layout of s:
    #   [w1_mu | b1_mu | w1_lv | b1_lv | w2_mu | b2_mu | w2_lv | b2_lv]
    # widths  [  H    |  H    |  H    |  H    |  O    |  O    |  O    |  O  ]
    s = jnp.dot(ce, w_ref[...], preferred_element_type=jnp.float32) + b_ref[...]

    pre_mu = s[:, 0:H] * x_sum + s[:, H:2 * H]
    pre_lv = s[:, 2 * H:3 * H] * x_sum + s[:, 3 * H:4 * H]
    if silu_bf16:
        # sigmoid on the bf16 EUP path (v6e/v7x), multiply kept in f32.
        h_mu = pre_mu * jax.nn.sigmoid(pre_mu.astype(jnp.bfloat16)).astype(jnp.float32)
        h_lv = pre_lv * jax.nn.sigmoid(pre_lv.astype(jnp.bfloat16)).astype(jnp.float32)
    else:
        h_mu = jax.nn.silu(pre_mu)
        h_lv = jax.nn.silu(pre_lv)
    hsum_mu = jnp.sum(h_mu, axis=-1, keepdims=True)      # (tile, 1)
    hsum_lv = jnp.sum(h_lv, axis=-1, keepdims=True)

    base = 4 * H
    mu = s[:, base + 0 * O:base + 1 * O] * hsum_mu + s[:, base + 1 * O:base + 2 * O]
    lv = s[:, base + 2 * O:base + 3 * O] * hsum_lv + s[:, base + 3 * O:base + 4 * O]

    std = jnp.maximum(jnp.exp(0.5 * lv), _EPS)           # torch clamp_min(eps) on std
    u_ref[...] = mu + std * noise_ref[...]
    mu_ref[...] = mu
    lv_ref[...] = lv


def fuse_params(params):
    """One-time fusion of the mu/logvar hypernet parameters into a single
    (C, 4H+4O) bf16 weight and (1, 4H+4O) f32 bias (hoisted out of forward)."""
    w_cat = jnp.concatenate(
        [params["w1T_mu"], params["w1T_lv"], params["w2T_mu"], params["w2T_lv"]],
        axis=1).astype(jnp.bfloat16)
    b_cat = jnp.concatenate(
        [params["b1_mu"], params["b1_lv"], params["b2_mu"], params["b2_lv"]],
        axis=1).astype(jnp.float32)
    return {"w_cat": w_cat, "b_cat": b_cat}


def confounder_posterior_forward(h, code_emb, fused_params, noise, *,
                                 hidden_dim, conf_dim, max_tile_bt=1024,
                                 silu_bf16=None):
    """ConfounderPosterior.forward (3-D code_emb branch).
    Returns (u_post, mu_post, logvar_post), each (B, T, conf_dim)."""
    assert hidden_dim % 128 == 0 and conf_dim % 128 == 0, (
        "the fused lane layout assumes hidden_dim/conf_dim are multiples of "
        "128 (module defaults 512/128); other values would force cross-vreg "
        "slices and masked stores")

    old_gen, vmem_cap = _device_profile()
    if silu_bf16 is None:
        silu_bf16 = not old_gen

    B = h.shape[0]
    x = h.reshape(B, -1).astype(jnp.float32)
    Bc, T, C = code_emb.shape
    assert Bc == B
    BT = B * T
    W = 4 * (hidden_dim + conf_dim)

    w_cat = fused_params["w_cat"]
    b_cat = fused_params["b_cat"]
    assert w_cat.shape == (C, W) and b_cat.shape == (1, W)

    # ---- VMEM budget -> row tile ------------------------------------------
    bf16, f32 = 2, 4
    hard_cap = min(96 * 1024 * 1024, int(vmem_cap * 0.75))   # 48 MiB v7x, 96 MiB v5e/v6e
    w_bytes = C * W * bf16 + W * f32                           # single-buffered weights
    io_row = 2 * (C * bf16 + f32 + conf_dim * f32)             # double-buffered inputs
    io_row += 2 * 3 * conf_dim * f32                           # double-buffered outputs
    tmp_row = (4 * (hidden_dim + conf_dim)                     # s
               + 2 * hidden_dim                                # h_mu/h_lv
               + 3 * conf_dim) * f32                           # mu/lv/std temporaries
    per_row = io_row + tmp_row

    tile_budget = int(0.65 * hard_cap)
    max_tile = max(16, (tile_budget - w_bytes) // per_row // 16 * 16)
    max_tile = min(max_tile, max_tile_bt)
    if BT >= 512:
        # Keep >= 2 grid steps so the "parallel" axis can shard across
        # TensorCores (matters on v7x's 2-TC megacore).
        max_tile = min(max_tile, max(256, (BT // 2) // 16 * 16))
    tile_bt, BT_pad = _choose_tile(BT, max_tile)

    # ---- Row tensors --------------------------------------------------------
    x_sum = jnp.sum(x, axis=-1, keepdims=True)                         # (B, 1)
    x_sum_bt = jnp.broadcast_to(x_sum[:, None, :], (B, T, 1)).reshape(BT, 1)
    code_flat = code_emb.reshape(BT, C).astype(jnp.bfloat16)
    noise_flat = noise.reshape(BT, conf_dim).astype(jnp.float32)

    if BT_pad != BT:
        # Rare fallback: pad rows with zero code/noise (bias-only outputs on
        # pad rows, sliced off below).
        pad = BT_pad - BT
        code_flat = jnp.pad(code_flat, ((0, pad), (0, 0)))
        x_sum_bt = jnp.pad(x_sum_bt, ((0, pad), (0, 0)))
        noise_flat = jnp.pad(noise_flat, ((0, pad), (0, 0)))

    grid = (BT_pad // tile_bt,)

    def row_spec(feat):
        return pl.BlockSpec((tile_bt, feat), lambda i: (i, 0))

    def const_spec(shape):
        # Grid-invariant parameter: constant index_map + single buffering.
        return pl.BlockSpec(shape, lambda i: (0, 0), pipeline_mode=pl.Buffered(1))

    in_specs = [
        row_spec(C),              # code_flat (bf16)
        row_spec(1),              # per-row sum(x) (f32)
        row_spec(conf_dim),       # noise (f32)
        const_spec((C, W)),       # fused weight (bf16)
        const_spec((1, W)),       # fused bias (f32)
    ]
    out_specs = [row_spec(conf_dim) for _ in range(3)]
    out_shape = [jax.ShapeDtypeStruct((BT_pad, conf_dim), jnp.float32)
                 for _ in range(3)]

    vmem_est = tile_bt * per_row + w_bytes
    vmem_limit = int(min(hard_cap,
                         max(int(1.5 * vmem_est) + (2 << 20), 32 * 1024 * 1024)))

    cost = pl.CostEstimate(
        flops=2 * BT_pad * C * W,
        transcendentals=BT_pad * (2 * hidden_dim + conf_dim),
        bytes_accessed=(BT_pad * (C * bf16 + f32 + conf_dim * f32)
                        + w_bytes
                        + 3 * BT_pad * conf_dim * f32),
    )

    kernel = functools.partial(
        _confounder_posterior_kernel,
        hidden_dim=hidden_dim, out_dim=conf_dim, silu_bf16=silu_bf16,
    )

    u, mu, lv = pl.pallas_call(
        kernel,
        out_shape=out_shape,
        grid_spec=pltpu.PrefetchScalarGridSpec(
            num_scalar_prefetch=0,
            grid=grid,
            in_specs=in_specs,
            out_specs=out_specs,
        ),
        compiler_params=pltpu.CompilerParams(
            dimension_semantics=("parallel",),
            vmem_limit_bytes=vmem_limit,
        ),
        cost_estimate=cost,
    )(code_flat, x_sum_bt, noise_flat, w_cat, b_cat)

    return (
        u[:BT].reshape(B, T, conf_dim),
        mu[:BT].reshape(B, T, conf_dim),
        lv[:BT].reshape(B, T, conf_dim),
    )


def init_params(key, code_dim, hidden_dim, conf_dim):
    """Matches PosteriorHypernet.__init__: w1_proj/w2_proj weights ~ N(0,0.01^2),
    biases = 0.  Weights are stored pre-transposed as (code_dim, out_features)."""
    ks = jax.random.split(key, 4)
    std = 0.01
    return {
        # mu hypernet: [weight_1 | bias_1] and [weight_2 | bias_2] lane halves
        "w1T_mu": std * jax.random.normal(ks[0], (code_dim, 2 * hidden_dim), jnp.float32),
        "b1_mu": jnp.zeros((1, 2 * hidden_dim), jnp.float32),
        "w2T_mu": std * jax.random.normal(ks[1], (code_dim, 2 * conf_dim), jnp.float32),
        "b2_mu": jnp.zeros((1, 2 * conf_dim), jnp.float32),
        # logvar hypernet
        "w1T_lv": std * jax.random.normal(ks[2], (code_dim, 2 * hidden_dim), jnp.float32),
        "b1_lv": jnp.zeros((1, 2 * hidden_dim), jnp.float32),
        "w2T_lv": std * jax.random.normal(ks[3], (code_dim, 2 * conf_dim), jnp.float32),
        "b2_lv": jnp.zeros((1, 2 * conf_dim), jnp.float32),
    }


def _ref_forward(h, code_emb, params, noise, *, hidden_dim, conf_dim, silu_bf16):
    """Pure-JAX reference of ConfounderPosterior.forward (3-D code_emb branch)
    with the same mixed precision as the kernel (bf16 matmul operands / f32
    accumulation; optional bf16 sigmoid, matching torch.autocast(bfloat16))."""
    B = h.shape[0]
    x = h.reshape(B, -1).astype(jnp.float32)
    _, T, C = code_emb.shape
    cf = code_emb.reshape(B * T, C).astype(jnp.bfloat16)
    x_sum = jnp.broadcast_to(
        jnp.sum(x, axis=-1, keepdims=True)[:, None, :], (B, T, 1)
    ).reshape(B * T, 1)

    def hyper(w1T, b1, w2T, b2):
        s1 = jnp.dot(cf, w1T.astype(jnp.bfloat16),
                     preferred_element_type=jnp.float32) + b1
        s2 = jnp.dot(cf, w2T.astype(jnp.bfloat16),
                     preferred_element_type=jnp.float32) + b2
        pre = s1[:, :hidden_dim] * x_sum + s1[:, hidden_dim:]
        if silu_bf16:
            hdn = pre * jax.nn.sigmoid(pre.astype(jnp.bfloat16)).astype(jnp.float32)
        else:
            hdn = jax.nn.silu(pre)
        h_sum = jnp.sum(hdn, axis=-1, keepdims=True)
        return s2[:, :conf_dim] * h_sum + s2[:, conf_dim:]

    mu = hyper(params["w1T_mu"], params["b1_mu"], params["w2T_mu"], params["b2_mu"])
    lv = hyper(params["w1T_lv"], params["b1_lv"], params["w2T_lv"], params["b2_lv"])
    std = jnp.maximum(jnp.exp(0.5 * lv), _EPS)
    u = mu + std * noise.reshape(B * T, conf_dim)
    return (u.reshape(B, T, conf_dim),
            mu.reshape(B, T, conf_dim),
            lv.reshape(B, T, conf_dim))


if __name__ == "__main__":
    # Small but kernel-friendly dims (module defaults are code=256, hidden=512,
    # conf=128; same structure at smaller size, lane splits stay 128-aligned).
    B, T = 2, 8
    code_dim = 128      # C
    hidden_dim = 128    # H
    conf_dim = 128      # posterior output dim
    D = 32              # flattened feature size of h

    key = jax.random.PRNGKey(0)
    k_h, k_c, k_n, k_p = jax.random.split(key, 4)

    h = jax.random.normal(k_h, (B, D), jnp.float32)
    code_emb = jax.random.normal(k_c, (B, T, code_dim), jnp.float32)
    noise = jax.random.normal(k_n, (B, T, conf_dim), jnp.float32)  # randn_like
    params = init_params(k_p, code_dim, hidden_dim, conf_dim)
    fused = fuse_params(params)   # hoisted, done once

    old_gen, _ = _device_profile()
    silu_bf16 = not old_gen       # bf16 EUP path only on v6e/v7x

    u, mu, lv = confounder_posterior_forward(
        h, code_emb, fused, noise,
        hidden_dim=hidden_dim, conf_dim=conf_dim, silu_bf16=silu_bf16,
    )
    jax.block_until_ready((u, mu, lv))

    # Pure-JAX reference with matching precision.
    u_ref, mu_ref, lv_ref = _ref_forward(
        h, code_emb, params, noise,
        hidden_dim=hidden_dim, conf_dim=conf_dim, silu_bf16=silu_bf16,
    )

    tol = 1e-2 if silu_bf16 else 2e-3
    assert jnp.allclose(mu, mu_ref, atol=tol, rtol=tol)
    assert jnp.allclose(lv, lv_ref, atol=tol, rtol=tol)
    assert jnp.allclose(u, u_ref, atol=tol, rtol=tol)

    print("KERNEL_OK")
</pallas_src>

<mosaic_0001>
module attributes {stable_mosaic.version = 11 : i64} {
  func.func @_confounder_posterior_kernel(%arg0: i32, %arg1: memref<16x128xbf16, #tpu.memory_space<vmem>>, %arg2: memref<16x1xf32, #tpu.memory_space<vmem>>, %arg3: memref<16x128xf32, #tpu.memory_space<vmem>>, %arg4: memref<128x1024xbf16, #tpu.memory_space<vmem>>, %arg5: memref<1x1024xf32, #tpu.memory_space<vmem>>, %arg6: memref<16x128xf32, #tpu.memory_space<vmem>>, %arg7: memref<16x128xf32, #tpu.memory_space<vmem>>, %arg8: memref<16x128xf32, #tpu.memory_space<vmem>>) attributes {dimension_semantics = [#tpu.dimension_semantics<parallel>], iteration_bounds = array<i64: 1>, scalar_prefetch = 0 : i64, scratch_operands = 0 : i64, tpu.core_type = #tpu.core_type<tc>, window_params = [{transform_indices = @transform_0, window_bounds = array<i64: 16, 128>}, {transform_indices = @transform_1, window_bounds = array<i64: 16, 1>}, {transform_indices = @transform_2, window_bounds = array<i64: 16, 128>}, {pipeline_mode = #tpu.pipeline_mode<synchronous>, transform_indices = @transform_3, window_bounds = array<i64: 128, 1024>}, {pipeline_mode = #tpu.pipeline_mode<synchronous>, transform_indices = @transform_4, window_bounds = array<i64: 1, 1024>}, {transform_indices = @transform_5, window_bounds = array<i64: 16, 128>}, {transform_indices = @transform_6, window_bounds = array<i64: 16, 128>}, {transform_indices = @transform_7, window_bounds = array<i64: 16, 128>}]} {
    %c0 = arith.constant 0 : index
    %c0_0 = arith.constant 0 : index
    %0 = vector.load %arg1[%c0, %c0_0] : memref<16x128xbf16, #tpu.memory_space<vmem>>, vector<16x128xbf16>
    %c0_1 = arith.constant 0 : index
    %c0_2 = arith.constant 0 : index
    %1 = vector.load %arg2[%c0_1, %c0_2] : memref<16x1xf32, #tpu.memory_space<vmem>>, vector<16x1xf32>
    %c0_3 = arith.constant 0 : index
    %c0_4 = arith.constant 0 : index
    %2 = vector.load %arg4[%c0_3, %c0_4] : memref<128x1024xbf16, #tpu.memory_space<vmem>>, vector<128x1024xbf16>
    %cst = arith.constant dense<0.000000e+00> : vector<16x1024xf32>
    %3 = tpu.matmul %0, %2, %cst {dimension_numbers = #tpu.dot_dimension_numbers<[1], [0], [0], [1], [0, 0, 1, 1], [], []>} : vector<16x128xbf16>, vector<128x1024xbf16>, vector<16x1024xf32> -> vector<16x1024xf32>
    %c0_5 = arith.constant 0 : index
    %c0_6 = arith.constant 0 : index
    %4 = vector.load %arg5[%c0_5, %c0_6] : memref<1x1024xf32, #tpu.memory_space<vmem>>, vector<1x1024xf32>
    %5 = vector.broadcast %4 : vector<1x1024xf32> to vector<16x1024xf32>
    %6 = arith.addf %3, %5 : vector<16x1024xf32>
    %7 = vector.extract_strided_slice %6 {offsets = [0, 0], sizes = [16, 128], strides = [1, 1]} : vector<16x1024xf32> to vector<16x128xf32>
    %8 = vector.broadcast %1 : vector<16x1xf32> to vector<16x128xf32>
    %9 = arith.mulf %7, %8 : vector<16x128xf32>
    %10 = vector.extract_strided_slice %6 {offsets = [0, 128], sizes = [16, 128], strides = [1, 1]} : vector<16x1024xf32> to vector<16x128xf32>
    %11 = arith.addf %9, %10 : vector<16x128xf32>
    %12 = vector.extract_strided_slice %6 {offsets = [0, 256], sizes = [16, 128], strides = [1, 1]} : vector<16x1024xf32> to vector<16x128xf32>
    %13 = vector.broadcast %1 : vector<16x1xf32> to vector<16x128xf32>
    %14 = arith.mulf %12, %13 : vector<16x128xf32>
    %15 = vector.extract_strided_slice %6 {offsets = [0, 384], sizes = [16, 128], strides = [1, 1]} : vector<16x1024xf32> to vector<16x128xf32>
    %16 = arith.addf %14, %15 : vector<16x128xf32>
    %17 = arith.truncf %11 : vector<16x128xf32> to vector<16x128xbf16>
    %18 = arith.negf %17 : vector<16x128xbf16>
    %19 = math.exp %18 : vector<16x128xbf16>
    %cst_7 = arith.constant 1.000000e+00 : bf16
    %20 = vector.broadcast %cst_7 : bf16 to vector<16x128xbf16>
    %21 = arith.addf %20, %19 : vector<16x128xbf16>
    %22 = arith.divf %20, %21 : vector<16x128xbf16>
    %23 = arith.extf %22 : vector<16x128xbf16> to vector<16x128xf32>
    %24 = arith.mulf %11, %23 : vector<16x128xf32>
    %25 = arith.truncf %16 : vector<16x128xf32> to vector<16x128xbf16>
    %26 = arith.negf %25 : vector<16x128xbf16>
    %27 = math.exp %26 : vector<16x128xbf16>
    %cst_8 = arith.constant 1.000000e+00 : bf16
    %28 = vector.broadcast %cst_8 : bf16 to vector<16x128xbf16>
    %29 = arith.addf %28, %27 : vector<16x128xbf16>
    %30 = arith.divf %28, %29 : vector<16x128xbf16>
    %31 = arith.extf %30 : vector<16x128xbf16> to vector<16x128xf32>
    %32 = arith.mulf %16, %31 : vector<16x128xf32>
    %cst_9 = arith.constant dense<0.000000e+00> : vector<16xf32>
    %33 = vector.multi_reduction <add>, %24, %cst_9 [1] : vector<16x128xf32> to vector<16xf32>
    %34 = vector.shape_cast %33 : vector<16xf32> to vector<16x1xf32>
    %cst_10 = arith.constant dense<0.000000e+00> : vector<16xf32>
    %35 = vector.multi_reduction <add>, %32, %cst_10 [1] : vector<16x128xf32> to vector<16xf32>
    %36 = vector.shape_cast %35 : vector<16xf32> to vector<16x1xf32>
    %37 = vector.extract_strided_slice %6 {offsets = [0, 512], sizes = [16, 128], strides = [1, 1]} : vector<16x1024xf32> to vector<16x128xf32>
    %38 = vector.broadcast %34 : vector<16x1xf32> to vector<16x128xf32>
    %39 = arith.mulf %37, %38 : vector<16x128xf32>
    %40 = vector.extract_strided_slice %6 {offsets = [0, 640], sizes = [16, 128], strides = [1, 1]} : vector<16x1024xf32> to vector<16x128xf32>
    %41 = arith.addf %39, %40 : vector<16x128xf32>
    %42 = vector.extract_strided_slice %6 {offsets = [0, 768], sizes = [16, 128], strides = [1, 1]} : vector<16x1024xf32> to vector<16x128xf32>
    %43 = vector.broadcast %36 : vector<16x1xf32> to vector<16x128xf32>
    %44 = arith.mulf %42, %43 : vector<16x128xf32>
    %45 = vector.extract_strided_slice %6 {offsets = [0, 896], sizes = [16, 128], strides = [1, 1]} : vector<16x1024xf32> to vector<16x128xf32>
    %46 = arith.addf %44, %45 : vector<16x128xf32>
    %cst_11 = arith.constant 5.000000e-01 : f32
    %47 = vector.broadcast %cst_11 : f32 to vector<16x128xf32>
    %48 = arith.mulf %47, %46 : vector<16x128xf32>
    %49 = math.exp %48 : vector<16x128xf32>
    %cst_12 = arith.constant 1.1920929E-7 : f32
    %50 = vector.broadcast %cst_12 : f32 to vector<16x128xf32>
    %51 = arith.maximumf %49, %50 : vector<16x128xf32>
    %c0_13 = arith.constant 0 : index
    %c0_14 = arith.constant 0 : index
    %52 = vector.load %arg3[%c0_13, %c0_14] : memref<16x128xf32, #tpu.memory_space<vmem>>, vector<16x128xf32>
    %53 = arith.mulf %51, %52 : vector<16x128xf32>
    %54 = arith.addf %41, %53 : vector<16x128xf32>
    %c0_15 = arith.constant 0 : index
    %c0_16 = arith.constant 0 : index
    %55 = vector.load %arg6[%c0_15, %c0_16] : memref<16x128xf32, #tpu.memory_space<vmem>>, vector<16x128xf32>
    tpu.vector_store %arg6[%c0_15, %c0_16], %54 {strides = array<i32>} : memref<16x128xf32, #tpu.memory_space<vmem>>, vector<16x128xf32>,
    %c0_17 = arith.constant 0 : index
    %c0_18 = arith.constant 0 : index
    %56 = vector.load %arg7[%c0_17, %c0_18] : memref<16x128xf32, #tpu.memory_space<vmem>>, vector<16x128xf32>
    tpu.vector_store %arg7[%c0_17, %c0_18], %41 {strides = array<i32>} : memref<16x128xf32, #tpu.memory_space<vmem>>, vector<16x128xf32>,
    %c0_19 = arith.constant 0 : index
    %c0_20 = arith.constant 0 : index
    %57 = vector.load %arg8[%c0_19, %c0_20] : memref<16x128xf32, #tpu.memory_space<vmem>>, vector<16x128xf32>
    tpu.vector_store %arg8[%c0_19, %c0_20], %46 {strides = array<i32>} : memref<16x128xf32, #tpu.memory_space<vmem>>, vector<16x128xf32>,
    return
  }
  func.func @transform_0(%arg0: i32) -> (i32, i32) {
    %c0_i32 = arith.constant 0 : i32
    %c0_i32_0 = arith.constant 0 : i32
    return %arg0, %c0_i32 : i32, i32
  }
  func.func @transform_1(%arg0: i32) -> (i32, i32) {
    %c0_i32 = arith.constant 0 : i32
    %c0_i32_0 = arith.constant 0 : i32
    return %arg0, %c0_i32 : i32, i32
  }
  func.func @transform_2(%arg0: i32) -> (i32, i32) {
    %c0_i32 = arith.constant 0 : i32
    %c0_i32_0 = arith.constant 0 : i32
    return %arg0, %c0_i32 : i32, i32
  }
  func.func @transform_3(%arg0: i32) -> (i32, i32) {
    %c0_i32 = arith.constant 0 : i32
    %c0_i32_0 = arith.constant 0 : i32
    %c0_i32_1 = arith.constant 0 : i32
    return %c0_i32, %c0_i32_0 : i32, i32
  }
  func.func @transform_4(%arg0: i32) -> (i32, i32) {
    %c0_i32 = arith.constant 0 : i32
    %c0_i32_0 = arith.constant 0 : i32
    %c0_i32_1 = arith.constant 0 : i32
    return %c0_i32, %c0_i32_0 : i32, i32
  }
  func.func @transform_5(%arg0: i32) -> (i32, i32) {
    %c0_i32 = arith.constant 0 : i32
    %c0_i32_0 = arith.constant 0 : i32
    return %arg0, %c0_i32 : i32, i32
  }
  func.func @transform_6(%arg0: i32) -> (i32, i32) {
    %c0_i32 = arith.constant 0 : i32
    %c0_i32_0 = arith.constant 0 : i32
    return %arg0, %c0_i32 : i32, i32
  }
  func.func @transform_7(%arg0: i32) -> (i32, i32) {
    %c0_i32 = arith.constant 0 : i32
    %c0_i32_0 = arith.constant 0 : i32
    return %arg0, %c0_i32 : i32, i32
  }
}

</mosaic_0001>

<bundles_post_ra>
// kernel: tpu_custom_call.1
= control target key start
LH: loop header
LB: loop body
LE: loop exit
PB: predicated region body
PF: predicated region fallthrough
CT: control target
= control target key end

     0   :  { %13 = vsyncpa [#allocation3], 0  ;;  %s1113_s0 = inlined_call_operand.hbm [shape: bf16[16,128], index: 0, kind: input, shape index: {}]   ;;  %s1114_s1 = inlined_call_operand.vmem [shape: f32[16,1], index: 1, kind: input, shape index: {}]   ;;  %s1115_s2 = inlined_call_operand.vmem [shape: f32[16,128], index: 2, kind: input, shape index: {}]   ;;  %s1116_s3 = inlined_call_operand.hbm [shape: bf16[128,1024], index: 3, kind: input, shape index: {}]   ;;  %s1117_s4 = inlined_call_operand.vmem [shape: f32[1,1024], index: 4, kind: input, shape index: {}]   ;;  %s1118_s5 = inlined_call_operand.hbm [shape: f32[16,128], index: 5, kind: output, shape index: {0}]   ;;  %s1119_s6 = inlined_call_operand.hbm [shape: f32[16,128], index: 6, kind: output, shape index: {1}]   ;;  %s1120_s7 = inlined_call_operand.hbm [shape: f32[16,128], index: 7, kind: output, shape index: {2}]  }
   0x1   :  { %14 = vsyncpa [#allocation6], 0 }
   0x2   :  { %15 = vsyncpa [#allocation4], 0 }
   0x3   :  { %16 = vsyncpa [#allocation9], 0  ;;  %s991_s24 = smov [#allocation2]  }
   0x4   :  { %s22_s25 = sshll.u32 %s991_s24, 4  ;;  %s23_s25 = int_to_ptr.vmem [resolvable:$true] %s22_s25 }
   0x5   :  { %s891_s26 = scalar_lea.vmem %s23_s25, 128  ;;  %p896_p1 = scmp.lt.s32.totalorder %s23_s25, %s23_s25 }
   0x6   :  { %p892_p0 = scmp.ne.s32.totalorder %s23_s25, %s891_s26  ;;  %p897_p2 = scmp.lt.s32.totalorder %s891_s26, %s891_s26 }
   0x8   :  { %p898_p3 = por %p897_p2, %p896_p1 }
   0xa   :  { %p899_p4 = pnand %p898_p3, %p892_p0 }
   0xc   :  { %902 = shalt.err (!%p899_p4)
}
   0xd   :  { %s992_s27 = smov 64   ;;  %s993_s28 = smov 4  }
   0xe   :  { %28 = dma.hbm_to_vmem [thread:$0]  %s1113_s0, 128, %s23_s25, [#allocation3], %s992_s27, %s992_s27, %s993_s28  }
   0xf   :  { %s994_s8 = smov [#allocation5]  }
  0x10   :  { %s38_s9 = sshll.u32 %s994_s8, 4  ;;  %s39_s9 = int_to_ptr.vmem [resolvable:$true] %s38_s9 }
  0x11   :  { %s911_s10 = scalar_lea.vmem %s39_s9, 8192  ;;  %p916_p6 = scmp.lt.s32.totalorder %s39_s9, %s39_s9 }
  0x12   :  { %p912_p5 = scmp.ne.s32.totalorder %s39_s9, %s911_s10  ;;  %p917_p7 = scmp.lt.s32.totalorder %s911_s10, %s911_s10 }
  0x14   :  { %p918_p8 = por %p917_p7, %p916_p6 }
  0x16   :  { %p919_p9 = pnand %p918_p8, %p912_p5 }
  0x18   :  { %922 = shalt.err (!%p919_p9)
}
  0x19   :  { %s995_s11 = smov 512   ;;  %s996_s12 = smov 32  }
  0x1a   :  { %44 = dma.hbm_to_vmem [thread:$0]  %s1116_s3, 8192, %s39_s9, [#allocation6], %s995_s11, %s995_s11, %s996_s12  }
  0x1b   :  { %983 = dma.done.wait [#allocation3], 128  }
  0x1c   :  { %984 = vsyncadd [#allocation3], 4294967168 }
  0x1d   :  { %985 = dma.done.wait [#allocation6], 8192  }
  0x1e   :  { %986 = vsyncadd [#allocation6], 4294959104  ;;  %v997_v0 = vmov 0   ;;  %v115_v1 = vld [vmem:[#allocation5 + $0x1c0] sm:$0xff]  ;;  %v116_v3 = vld [vmem:[#allocation5 + $0x1c8] sm:$0xff]  ;;  %s999_s19 = smov [#allocation10]  }
  0x1f   :  { %523 = vmatprep.mubr.bf16.mxu0 %v997_v0  ;;  %566 = vmatprep.mubr.bf16.mxu1 %v997_v0  ;;  %v119_v2 = vld [vmem:[#allocation5 + $0x1e0] sm:$0xff]  ;;  %v120_v5 = vld [vmem:[#allocation5 + $0x1e8] sm:$0xff]  ;;  %v57_v35 = vld [vmem:[%s1114_s1] sm:$0xff]  ;;  %s770_s20 = sshll.u32 %s999_s19, 4  ;;  %s771_s20 = int_to_ptr.vmem [resolvable:$true] %s770_s20 }
  0x20   :  { %869 = vset.pattern.permute.xlu0 %v997_v0  ;;  %v848_v4 = vcombine.high %v115_v1, %v119_v2  ;;  %v847_v6 = vcombine.low %v115_v1, %v119_v2  ;;  %v107_v7 = vld [vmem:[#allocation5 + $0x180] sm:$0xff]  ;;  %v850_v9 = vcombine.high %v116_v3, %v120_v5  ;;  %v849_v10 = vcombine.low %v116_v3, %v120_v5  ;;  %v108_v12 = vld [vmem:[#allocation5 + $0x188] sm:$0xff]  ;;  %v117_v2 = vld [vmem:[#allocation5 + $0x1d0] sm:$0xff] }
  0x21   :  { %v111_v8 = vld [vmem:[#allocation5 + $0x1a0] sm:$0xff]  ;;  %v112_v13 = vld [vmem:[#allocation5 + $0x1a8] sm:$0xff]  ;;  %665 = vperm.xlu0 %869, %v57_v35   ;;  %v121_v3 = vld [vmem:[#allocation5 + $0x1f0] sm:$0xff] }
  0x22   :  { %v840_v11 = vcombine.high %v107_v7, %v111_v8  ;;  %v99_v14 = vld [vmem:[#allocation5 + $0x140] sm:$0xff]  ;;  %491 = vmatprep.subr.bf16.mxu0 %v848_v4  ;;  %v842_v15 = vcombine.high %v108_v12, %v112_v13  ;;  %v100_v17 = vld [vmem:[#allocation5 + $0x148] sm:$0xff]  ;;  %534 = vmatprep.subr.bf16.mxu1 %v850_v9  ;;  %v839_v19 = vcombine.low %v107_v7, %v111_v8  ;;  %v118_v4 = vld [vmem:[#allocation5 + $0x1d8] sm:$0xff] }
  0x23   :  { %v103_v16 = vld [vmem:[#allocation5 + $0x160] sm:$0xff]  ;;  %v104_v18 = vld [vmem:[#allocation5 + $0x168] sm:$0xff]  ;;  %492 = vmatpush1.bf16.msra.mxu0 %v847_v6  ;;  %535 = vmatpush1.bf16.msra.mxu1 %v849_v10  ;;  %v841_v20 = vcombine.low %v108_v12, %v112_v13  ;;  %v122_v5 = vld [vmem:[#allocation5 + $0x1f8] sm:$0xff]  ;;  %v852_v8 = vcombine.high %v117_v2, %v121_v3 }
  0x24   :  { %493 = vmatprep.subr.bf16.mxu0 %v840_v11  ;;  %v832_v21 = vcombine.high %v99_v14, %v103_v16  ;;  %536 = vmatprep.subr.bf16.mxu1 %v842_v15  ;;  %v834_v22 = vcombine.high %v100_v17, %v104_v18  ;;  %v91_v23 = vld [vmem:[#allocation5 + $0x100] sm:$0xff]  ;;  %v92_v25 = vld [vmem:[#allocation5 + $0x108] sm:$0xff]  ;;  %v831_v27 = vcombine.low %v99_v14, %v103_v16  ;;  %v109_v10 = vld [vmem:[#allocation5 + $0x190] sm:$0xff] }
  0x25   :  { %v95_v24 = vld [vmem:[#allocation5 + $0x120] sm:$0xff]  ;;  %v96_v26 = vld [vmem:[#allocation5 + $0x128] sm:$0xff]  ;;  %v833_v28 = vcombine.low %v100_v17, %v104_v18  ;;  %v854_v9 = vcombine.high %v118_v4, %v122_v5  ;;  %v113_v11 = vld [vmem:[#allocation5 + $0x1b0] sm:$0xff]  ;;  %v851_v15 = vcombine.low %v117_v2, %v121_v3  ;;  %v853_v16 = vcombine.low %v118_v4, %v122_v5 }
  0x26   :  { %v824_v29 = vcombine.high %v91_v23, %v95_v24  ;;  %v83_v30 = vld [vmem:[#allocation5 + $0xc0] sm:$0xff]  ;;  %v826_v31 = vcombine.high %v92_v25, %v96_v26  ;;  %v84_v33 = vld [vmem:[#allocation5 + $0xc8] sm:$0xff]  ;;  %v823_v36 = vcombine.low %v91_v23, %v95_v24  ;;  %v825_v37 = vcombine.low %v92_v25, %v96_v26  ;;  %v1058_v12 = vld [vmem:[#allocation2] sm:$0xff]  }
  0x27   :  { %494 = vmatpush1.bf16.msra.mxu0 %v839_v19  ;;  %537 = vmatpush1.bf16.msra.mxu1 %v841_v20  ;;  %v87_v32 = vld [vmem:[#allocation5 + $0xe0] sm:$0xff]  ;;  %v88_v34 = vld [vmem:[#allocation5 + $0xe8] sm:$0xff]  ;;  %v110_v13 = vld [vmem:[#allocation5 + $0x198] sm:$0xff]  ;;  %v844_v17 = vcombine.high %v109_v10, %v113_v11  ;;  %v843_v23 = vcombine.low %v109_v10, %v113_v11  ;;  %v125_v5 = vlaneseq }
  0x28   :  { %495 = vmatprep.subr.bf16.mxu0 %v832_v21  ;;  %538 = vmatprep.subr.bf16.mxu1 %v834_v22  ;;  %v816_v38 = vcombine.high %v83_v30, %v87_v32  ;;  %v58_v39 = vld [vmem:[%s1114_s1 + $0x8] sm:$0xff]  ;;  %v818_v40 = vcombine.high %v84_v33, %v88_v34  ;;  %v76_v43 = vld [vmem:[#allocation5 + $0x88] sm:$0xff]  ;;  %v815_v45 = vcombine.low %v83_v30, %v87_v32  ;;  %v114_v14 = vld [vmem:[#allocation5 + $0x1b8] sm:$0xff] }
  0x29   :  { %v75_v41 = vld [vmem:[#allocation5 + $0x80] sm:$0xff]  ;;  %v80_v44 = vld [vmem:[#allocation5 + $0xa8] sm:$0xff]  ;;  %670 = vperm.xlu0 %869, %v58_v39   ;;  %v817_v46 = vcombine.low %v84_v33, %v88_v34  ;;  %v846_v18 = vcombine.high %v110_v13, %v114_v14  ;;  %v101_v19 = vld [vmem:[#allocation5 + $0x150] sm:$0xff]  ;;  %v845_v24 = vcombine.low %v110_v13, %v114_v14 }
  0x2a   :  { %v79_v42 = vld [vmem:[#allocation5 + $0xa0] sm:$0xff]  ;;  %v810_v48 = vcombine.high %v76_v43, %v80_v44  ;;  %v68_v51 = vld [vmem:[#allocation5 + $0x48] sm:$0xff]  ;;  %v809_v54 = vcombine.low %v76_v43, %v80_v44  ;;  %v105_v20 = vld [vmem:[#allocation5 + $0x170] sm:$0xff] }
  0x2b   :  { %496 = vmatpush1.bf16.msra.mxu0 %v831_v27  ;;  %539 = vmatpush1.bf16.msra.mxu1 %v833_v28  ;;  %v808_v47 = vcombine.high %v75_v41, %v79_v42  ;;  %v67_v49 = vld [vmem:[#allocation5 + $0x40] sm:$0xff]  ;;  %v72_v52 = vld [vmem:[#allocation5 + $0x68] sm:$0xff]  ;;  %v807_v53 = vcombine.low %v75_v41, %v79_v42  ;;  %v102_v21 = vld [vmem:[#allocation5 + $0x158] sm:$0xff]  ;;  %v836_v25 = vcombine.high %v101_v19, %v105_v20 }
  0x2c   :  { %497 = vmatprep.subr.bf16.mxu0 %v824_v29  ;;  %540 = vmatprep.subr.bf16.mxu1 %v826_v31  ;;  %v71_v50 = vld [vmem:[#allocation5 + $0x60] sm:$0xff]  ;;  %v802_v56 = vcombine.high %v68_v51, %v72_v52  ;;  %v60_v59 = vld [vmem:[#allocation5 + $0x8] sm:$0xff]  ;;  %v801_v62 = vcombine.low %v68_v51, %v72_v52  ;;  %v106_v22 = vld [vmem:[#allocation5 + $0x178] sm:$0xff]  ;;  %v835_v31 = vcombine.low %v101_v19, %v105_v20 }
  0x2d   :  { %v800_v55 = vcombine.high %v67_v49, %v71_v50  ;;  %v59_v57 = vld [vmem:[#allocation5] sm:$0xff]  ;;  %v64_v60 = vld [vmem:[#allocation5 + $0x28] sm:$0xff]  ;;  %v799_v61 = vcombine.low %v67_v49, %v71_v50  ;;  %v838_v26 = vcombine.high %v102_v21, %v106_v22  ;;  %v93_v27 = vld [vmem:[#allocation5 + $0x110] sm:$0xff]  ;;  %v837_v32 = vcombine.low %v102_v21, %v106_v22 }
  0x2e   :  { %v63_v58 = vld [vmem:[#allocation5 + $0x20] sm:$0xff]  ;;  %v794_v1 = vcombine.high %v60_v59, %v64_v60  ;;  %v793_v7 = vcombine.low %v60_v59, %v64_v60  ;;  %v97_v28 = vld [vmem:[#allocation5 + $0x130] sm:$0xff]  ;;  %v94_v29 = vld [vmem:[#allocation5 + $0x118] sm:$0xff] }
  0x2f   :  { %498 = vmatpush1.bf16.msra.mxu0 %v823_v36  ;;  %541 = vmatpush1.bf16.msra.mxu1 %v825_v37  ;;  %v792_v63 = vcombine.high %v59_v57, %v63_v58  ;;  %v791_v6 = vcombine.low %v59_v57, %v63_v58  ;;  %v98_v30 = vld [vmem:[#allocation5 + $0x138] sm:$0xff]  ;;  %v828_v33 = vcombine.high %v93_v27, %v97_v28  ;;  %v85_v35 = vld [vmem:[#allocation5 + $0xd0] sm:$0xff] }
  0x30   :  { %499 = vmatprep.subr.bf16.mxu0 %v816_v38  ;;  %542 = vmatprep.subr.bf16.mxu1 %v818_v40  ;;  %v830_v34 = vcombine.high %v94_v29, %v98_v30  ;;  %v89_v36 = vld [vmem:[#allocation5 + $0xf0] sm:$0xff]  ;;  %v86_v37 = vld [vmem:[#allocation5 + $0xd8] sm:$0xff]  ;;  %v827_v39 = vcombine.low %v93_v27, %v97_v28  ;;  %v829_v40 = vcombine.low %v94_v29, %v98_v30 }
  0x31   :  { %v90_v38 = vld [vmem:[#allocation5 + $0xf8] sm:$0xff]  ;;  %v820_v41 = vcombine.high %v85_v35, %v89_v36  ;;  %v77_v42 = vld [vmem:[#allocation5 + $0x90] sm:$0xff] }
  0x32   :  { %v81_v43 = vld [vmem:[#allocation5 + $0xb0] sm:$0xff]  ;;  %v78_v44 = vld [vmem:[#allocation5 + $0x98] sm:$0xff] }
  0x33   :  { %500 = vmatpush1.bf16.msra.mxu0 %v815_v45  ;;  %543 = vmatpush1.bf16.msra.mxu1 %v817_v46  ;;  %v82_v45 = vld [vmem:[#allocation5 + $0xb8] sm:$0xff]  ;;  %v819_v46 = vcombine.low %v85_v35, %v89_v36  ;;  %v69_v50 = vld [vmem:[#allocation5 + $0x50] sm:$0xff] }
  0x34   :  { %501 = vmatprep.subr.bf16.mxu0 %v808_v47  ;;  %544 = vmatprep.subr.bf16.mxu1 %v810_v48  ;;  %v821_v47 = vcombine.low %v86_v37, %v90_v38  ;;  %v812_v48 = vcombine.high %v77_v42, %v81_v43  ;;  %v814_v49 = vcombine.high %v78_v44, %v82_v45  ;;  %v73_v51 = vld [vmem:[#allocation5 + $0x70] sm:$0xff]  ;;  %v70_v52 = vld [vmem:[#allocation5 + $0x58] sm:$0xff] }
  0x35   :  { %v61_v58 = vld [vmem:[#allocation5 + $0x10] sm:$0xff]  ;;  %v62_v60 = vld [vmem:[#allocation5 + $0x18] sm:$0xff] }
  0x36   :  { %v65_v59 = vld [vmem:[#allocation5 + $0x30] sm:$0xff] }
  0x37   :  { %502 = vmatpush1.bf16.msra.mxu0 %v807_v53  ;;  %545 = vmatpush1.bf16.msra.mxu1 %v809_v54  ;;  %v74_v53 = vld [vmem:[#allocation5 + $0x78] sm:$0xff]  ;;  %v811_v54 = vcombine.low %v77_v42, %v81_v43  ;;  %v795_v3 = vcombine.low %v61_v58, %v65_v59 }
  0x38   :  { %503 = vmatprep.subr.bf16.mxu0 %v800_v55  ;;  %546 = vmatprep.subr.bf16.mxu1 %v802_v56  ;;  %v813_v55 = vcombine.low %v78_v44, %v82_v45  ;;  %v804_v56 = vcombine.high %v69_v50, %v73_v51  ;;  %v806_v57 = vcombine.high %v70_v52, %v74_v53 }
  0x3b   :  { %504 = vmatpush1.bf16.msra.mxu0 %v799_v61  ;;  %547 = vmatpush1.bf16.msra.mxu1 %v801_v62  ;;  %v66_v61 = vld [vmem:[#allocation5 + $0x38] sm:$0xff]  ;;  %v803_v62 = vcombine.low %v69_v50, %v73_v51 }
  0x3c   :  { %505 = vmatprep.subr.bf16.mxu0 %v792_v63  ;;  %548 = vmatprep.subr.bf16.mxu1 %v794_v1  ;;  %v805_v63 = vcombine.low %v70_v52, %v74_v53  ;;  %v796_v1 = vcombine.high %v61_v58, %v65_v59  ;;  %v798_v2 = vcombine.high %v62_v60, %v66_v61 }
  0x3d   :  { %v797_v4 = vcombine.low %v62_v60, %v66_v61 }
  0x3f   :  { %506 = vmatpush1.bf16.msra.mxu0 %v791_v6  ;;  %549 = vmatpush1.bf16.msra.mxu1 %v793_v7  ;;  %v1066_v6 = vshrl.u32 %v125_v5, 7 }
  0x40   :  { %577 = vmatprep.subr.bf16.mxu0 %v852_v8  ;;  %620 = vmatprep.subr.bf16.mxu1 %v854_v9  ;;  %v1072_v8 = vld [vmem:[%s1117_s4] sm:$0xff]  ;;  %s998_s4 = smov [#allocation8]  }
  0x41   :  { %v127_v7 = vsub.s32 0, %v1066_v6  ;;  %v135_v9 = vsub.s32 2, %v1066_v6  ;;  %v131_v11 = vsub.s32 1, %v1066_v6  ;;  %v143_v61 = vsub.s32 4, %v1066_v6  ;;  %s758_s18 = sshll.u32 %s998_s4, 4  ;;  %s759_s18 = int_to_ptr.vmem [resolvable:$true] %s758_s18 }
  0x42   :  { %524 = vmatmul.mubr.bf16.vlgmr.msra.gmra.mxu0 %v1058_v12  ;;  %567 = vmatmul.mubr.bf16.vlgmr.msra.gmra.mxu1 %v1058_v12  ;;  %v155_v5 = vsub.s32 7, %v1066_v6  ;;  %s923_s21 = scalar_lea.vmem %s759_s18, 256  ;;  %p928_p11 = scmp.lt.s32.totalorder %s759_s18, %s759_s18 }
  0x43   :  { %578 = vmatpush1.bf16.msra.mxu0 %v851_v15  ;;  %621 = vmatpush1.bf16.msra.mxu1 %v853_v16  ;;  %v128_v10 = vrot.slane %v1072_v8, %v127_v7  ;;  %v136_v13 = vrot.slane %v1072_v8, %v135_v9  ;;  %p924_p10 = scmp.ne.s32.totalorder %s759_s18, %s923_s21  ;;  %p929_p12 = scmp.lt.s32.totalorder %s923_s21, %s923_s21 }
  0x44   :  { %579 = vmatprep.subr.bf16.mxu0 %v844_v17  ;;  %622 = vmatprep.subr.bf16.mxu1 %v846_v18  ;;  %v132_v18 = vrot.slane %v1072_v8, %v131_v11 }
  0x45   :  { %652 = vmatprep.mubr.bf16.mxu1 %v997_v0  ;;  %609 = vmatprep.mubr.bf16.mxu0 %v997_v0  ;;  %v822_v0 = vcombine.high %v86_v37, %v90_v38  ;;  %p930_p13 = por %p929_p12, %p928_p11 }
  0x47   :  { %580 = vmatpush1.bf16.msra.mxu0 %v843_v23  ;;  %623 = vmatpush1.bf16.msra.mxu1 %v845_v24  ;;  %p931_p0 = pnand %p930_p13, %p924_p10 }
  0x48   :  { %581 = vmatprep.subr.bf16.mxu0 %v836_v25  ;;  %624 = vmatprep.subr.bf16.mxu1 %v838_v26 }
  0x4b   :  { %582 = vmatpush1.bf16.msra.mxu0 %v835_v31  ;;  %625 = vmatpush1.bf16.msra.mxu1 %v837_v32 }
  0x4c   :  { %583 = vmatprep.subr.bf16.mxu0 %v828_v33  ;;  %626 = vmatprep.subr.bf16.mxu1 %v830_v34 }
  0x4f   :  { %584 = vmatpush1.bf16.msra.mxu0 %v827_v39  ;;  %627 = vmatpush1.bf16.msra.mxu1 %v829_v40 }
  0x50   :  { %585 = vmatprep.subr.bf16.mxu0 %v820_v41  ;;  %628 = vmatprep.subr.bf16.mxu1 %v822_v0 }
  0x53   :  { %586 = vmatpush1.bf16.msra.mxu0 %v819_v46  ;;  %629 = vmatpush1.bf16.msra.mxu1 %v821_v47 }
  0x54   :  { %587 = vmatprep.subr.bf16.mxu0 %v812_v48  ;;  %630 = vmatprep.subr.bf16.mxu1 %v814_v49 }
  0x57   :  { %588 = vmatpush1.bf16.msra.mxu0 %v811_v54  ;;  %631 = vmatpush1.bf16.msra.mxu1 %v813_v55 }
  0x58   :  { %589 = vmatprep.subr.bf16.mxu0 %v804_v56  ;;  %632 = vmatprep.subr.bf16.mxu1 %v806_v57 }
  0x5b   :  { %590 = vmatpush1.bf16.msra.mxu0 %v803_v62  ;;  %633 = vmatpush1.bf16.msra.mxu1 %v805_v63  ;;  %v151_v62 = vsub.s32 6, %v1066_v6 }
  0x5c   :  { %591 = vmatprep.subr.bf16.mxu0 %v796_v1  ;;  %634 = vmatprep.subr.bf16.mxu1 %v798_v2  ;;  %v147_v1 = vsub.s32 5, %v1066_v6 }
  0x5e   :  { %v148_v9 = vrot.slane %v1072_v8, %v147_v1 }
  0x5f   :  { %592 = vmatpush1.bf16.msra.mxu0 %v795_v3  ;;  %635 = vmatpush1.bf16.msra.mxu1 %v797_v4  ;;  %v144_v3 = vrot.slane %v1072_v8, %v143_v61  ;;  %v152_v4 = vrot.slane %v1072_v8, %v151_v62 }
  0x62   :  { %610 = vmatmul.mubr.bf16.vlgmr.msra.gmra.mxu0 %v1058_v12  ;;  %653 = vmatmul.mubr.bf16.vlgmr.msra.gmra.mxu1 %v1058_v12  ;;  %v139_v12 = vsub.s32 3, %v1066_v6 }
  0x64   :  { %v140_v21 = vrot.slane %v1072_v8, %v139_v12  ;;  %v156_v12 = vrot.slane %v1072_v8, %v155_v5 }
  0x9c   :  { %v666_v14 = vpop.permute.xlu0 %665 }
  0xa4   :  { %v671_v29 = vpop.permute.xlu0 %670 }
 0x102   :  { %v525_v15 = vpop.f32.mrf.mxu0  ;;  %v568_v17 = vpop.f32.mrf.mxu1 }
 0x103   :  { %v526_v16 = vadd.f32 %v525_v15, %v128_v10  ;;  %v569_v19 = vadd.f32 %v568_v17, %v136_v13 }
 0x104   :  { %v527_v20 = vpop.f32.mrf.mxu0  ;;  %v570_v22 = vpop.f32.mrf.mxu1 }
 0x105   :  { %v673_v24 = vmul.f32 %v666_v14, %v526_v16  ;;  %v528_v25 = vadd.f32 %v527_v20, %v132_v18  ;;  %v677_v28 = vmul.f32 %v666_v14, %v569_v19  ;;  %v571_v30 = vadd.f32 %v570_v22, %v140_v21 }
 0x106   :  { %v529_v23 = vpop.f32.mrf.mxu0  ;;  %v572_v27 = vpop.f32.mrf.mxu1 }
 0x107   :  { %v530_v26 = vadd.f32 %v529_v23, %v128_v10  ;;  %v573_v31 = vadd.f32 %v572_v27, %v136_v13  ;;  %v675_v38 = vadd.f32 %v673_v24, %v528_v25  ;;  %v679_v41 = vadd.f32 %v677_v28, %v571_v30 }
 0x108   :  { %v531_v32 = vpop.f32.mrf.mxu0  ;;  %v574_v35 = vpop.f32.mrf.mxu1 }
 0x109   :  { %v674_v33 = vmul.f32 %v671_v29, %v530_v26  ;;  %v532_v34 = vadd.f32 %v531_v32, %v132_v18  ;;  %v678_v36 = vmul.f32 %v671_v29, %v573_v31  ;;  %v575_v37 = vadd.f32 %v574_v35, %v140_v21 }
 0x10b   :  { %v676_v39 = vadd.f32 %v674_v33, %v532_v34  ;;  %v680_v40 = vadd.f32 %v678_v36, %v575_v37 }
 0x10d   :  { %v681_v0 = vpack.c.bf16 %v676_v39, %v675_v38  ;;  %v693_v42 = vpack.c.bf16 %v680_v40, %v679_v41 }
 0x10f   :  { %v855_v43 = vmul.bf16 3216621497, %v681_v0  ;;  %v856_v44 = vmul.bf16 3216621497, %v693_v42 }
 0x111   :  { %871 = vpow.bf16 %v855_v43 }
 0x112   :  { %873 = vpow.bf16 %v856_v44 }
 0x11f   :  { %v872_v45 = vpop.eup %871 }
 0x120   :  { %v874_v46 = vpop.eup %873  ;;  %v686_v47 = vadd.bf16 1065369472, %v872_v45 }
 0x121   :  { %v698_v48 = vadd.bf16 1065369472, %v874_v46 }
 0x122   :  { %875 = vrcp.bf16 %v686_v47  ;;  %v654_v63 = vpop.f32.mrf.mxu1  ;;  %v611_v2 = vpop.f32.mrf.mxu0 }
 0x123   :  { %877 = vrcp.bf16 %v698_v48  ;;  %v612_v11 = vadd.f32 %v611_v2, %v144_v3  ;;  %v655_v13 = vadd.f32 %v654_v63, %v152_v4 }
 0x124   :  { %v656_v7 = vpop.f32.mrf.mxu1  ;;  %v613_v10 = vpop.f32.mrf.mxu0 }
 0x125   :  { %v614_v15 = vadd.f32 %v613_v10, %v148_v9  ;;  %v657_v20 = vadd.f32 %v656_v7, %v156_v12 }
 0x126   :  { %v658_v14 = vpop.f32.mrf.mxu1  ;;  %v615_v19 = vpop.f32.mrf.mxu0 }
 0x127   :  { %v659_v24 = vadd.f32 %v658_v14, %v152_v4  ;;  %v616_v8 = vadd.f32 %v615_v19, %v144_v3 }
 0x128   :  { %v660_v22 = vpop.f32.mrf.mxu1  ;;  %v617_v26 = vpop.f32.mrf.mxu0 }
 0x129   :  { %v661_v27 = vadd.f32 %v660_v22, %v156_v12  ;;  %v618_v32 = vadd.f32 %v617_v26, %v148_v9 }
 0x130   :  { %v876_v49 = vpop.eup %875 }
 0x131   :  { %v878_v50 = vpop.eup %877  ;;  %v688_v51 = vmul.bf16 1065369472, %v876_v49 }
 0x132   :  { %v700_v52 = vmul.bf16 1065369472, %v878_v50 }
 0x133   :  { %v689_v53 = vunpack.c.l.bf16 %v688_v51  ;;  %v690_v59 = vunpack.c.h.bf16 %v688_v51 }
 0x134   :  { %v701_v54 = vunpack.c.l.bf16 %v700_v52  ;;  %v702_v57 = vunpack.c.h.bf16 %v700_v52 }
 0x135   :  { %v691_v55 = vmul.f32 %v689_v53, %v675_v38  ;;  %v692_v60 = vmul.f32 %v690_v59, %v676_v39 }
 0x136   :  { %v703_v56 = vmul.f32 %v701_v54, %v679_v41  ;;  %v704_v58 = vmul.f32 %v702_v57, %v680_v40 }
 0x137   :  { %705 = vadd.xlane.f32.xlu0 %v691_v55 }
 0x138   :  { %709 = vadd.xlane.f32.xlu1 %v703_v56 }
 0x13c   :  { %711 = vadd.xlane.f32.xlu1 %v704_v58 }
 0x140   :  { %707 = vadd.xlane.f32.xlu1 %v692_v60 }
 0x1c0   :  { %v706_v16 = vpop.xlane.xlu0 %705 }
 0x1c1   :  { %v710_v17 = vpop.xlane.xlu1 %709  ;;  %v713_v18 = vmul.f32 %v706_v16, %v612_v11 }
 0x1c2   :  { %v717_v21 = vmul.f32 %v710_v17, %v655_v13 }
 0x1c3   :  { %v715_v23 = vadd.f32 %v713_v18, %v614_v15 }
 0x1c4   :  { %v719_v6 = vadd.f32 %v717_v21, %v657_v20 }
 0x1c5   :  { %737 = vst [vmem:[#allocation8] sm:$0xff] %v715_v23  ;;  %v712_v25 = vpop.xlane.xlu1 %711 }
 0x1c6   :  { %v721_v28 = vmul.f32 0.5, %v719_v6  ;;  %739 = vst [vmem:[#allocation10] sm:$0xff] %v719_v6  ;;  %v718_v29 = vmul.f32 %v712_v25, %v659_v24 }
 0x1c8   :  { %v723_v30 = vmul.f32 1.442695, %v721_v28  ;;  %v720_v31 = vadd.f32 %v718_v29, %v661_v27 }
 0x1c9   :  { %v708_v33 = vpop.xlane.xlu1 %707 }
 0x1ca   :  { %879 = vpow2.f32 %v723_v30  ;;  %v722_v34 = vmul.f32 0.5, %v720_v31  ;;  %740 = vst [vmem:[#allocation10 + $0x8] sm:$0xff] %v720_v31  ;;  %v714_v35 = vmul.f32 %v708_v33, %v616_v8 }
 0x1cc   :  { %v725_v36 = vmul.f32 1.442695, %v722_v34  ;;  %v716_v37 = vadd.f32 %v714_v35, %v618_v32 }
 0x1ce   :  { %881 = vpow2.f32 %v725_v36  ;;  %738 = vst [vmem:[#allocation8 + $0x8] sm:$0xff] %v716_v37 }
 0x1cf   :  { %934 = shalt.err (!%p931_p0)
}
 0x1d0   :  { %s1000_s22 = smov 128   ;;  %s1001_s23 = smov 8  }
 0x1d1   :  { %764 = dma.vmem_to_hbm [thread:$0]  %s759_s18, 256, %s1119_s6, [#allocation9], %s1000_s22, %s1000_s22, %s1001_s23  }
 0x1d2   :  { %s943_s26 = scalar_lea.vmem %s771_s20, 256  ;;  %p948_p2 = scmp.lt.s32.totalorder %s771_s20, %s771_s20 }
 0x1d3   :  { %p944_p1 = scmp.ne.s32.totalorder %s771_s20, %s943_s26  ;;  %p949_p3 = scmp.lt.s32.totalorder %s943_s26, %s943_s26 }
 0x1d5   :  { %p950_p4 = por %p949_p3, %p948_p2 }
 0x1d7   :  { %p951_p5 = pnand %p950_p4, %p944_p1 }
 0x1d9   :  { %954 = shalt.err (!%p951_p5)
}
 0x1da   :  { %776 = dma.vmem_to_hbm [thread:$0]  %s771_s20, 256, %s1120_s7, [#allocation9], %s1000_s22, %s1000_s22, %s1001_s23   ;;  %v880_v38 = vpop.eup %879 }
 0x1db   :  { %v729_v39 = vld [vmem:[%s1115_s2] sm:$0xff]  ;;  %v727_v40 = vmax.f32 %v880_v38, 1.1920929e-07  ;;  %v882_v0 = vpop.eup %881  ;;  %v730_v42 = vld [vmem:[%s1115_s2 + $0x8] sm:$0xff]  ;;  %s1002_s9 = smov [#allocation7]  }
 0x1dc   :  { %v728_v44 = vmax.f32 %v882_v0, 1.1920929e-07  ;;  %s746_s10 = sshll.u32 %s1002_s9, 4  ;;  %s747_s10 = int_to_ptr.vmem [resolvable:$true] %s746_s10 }
 0x1dd   :  { %v731_v41 = vmul.f32 %v729_v39, %v727_v40  ;;  %s963_s7 = scalar_lea.vmem %s747_s10, 256  ;;  %p968_p7 = scmp.lt.s32.totalorder %s747_s10, %s747_s10 }
 0x1de   :  { %v732_v45 = vmul.f32 %v730_v42, %v728_v44  ;;  %p964_p6 = scmp.ne.s32.totalorder %s747_s10, %s963_s7  ;;  %p969_p8 = scmp.lt.s32.totalorder %s963_s7, %s963_s7 }
 0x1df   :  { %v733_v43 = vadd.f32 %v731_v41, %v715_v23 }
 0x1e0   :  { %v734_v46 = vadd.f32 %v732_v45, %v716_v37  ;;  %p970_p9 = por %p969_p8, %p968_p7 }
 0x1e1   :  { %735 = vst [vmem:[#allocation7] sm:$0xff] %v733_v43 }
 0x1e2   :  { %736 = vst [vmem:[#allocation7 + $0x8] sm:$0xff] %v734_v46  ;;  %p971_p10 = pnand %p970_p9, %p964_p6 }
 0x1e4   :  { %974 = shalt.err (!%p971_p10)
}
 0x1e5   :  { %752 = dma.vmem_to_hbm [thread:$0]  %s747_s10, 256, %s1118_s5, [#allocation4], %s1000_s22, %s1000_s22, %s1001_s23  }
 0x1e6   :  { %987 = dma.done.wait [#allocation4], 256  }
 0x1e7   :  { %988 = vsyncadd [#allocation4], 4294967040 }
 0x1e8   :  { %989 = dma.done.wait [#allocation9], 512  }
 0x1e9   :  { %990 = vsyncadd [#allocation9], 4294966784 }
 0x1ea   :  { %786 = vsyncpa [#allocation3], 1 }
 0x1eb   :  { %787 = vsyncpa [#allocation6], 1 }
 0x1ec   :  { %788 = vsyncpa [#allocation4], 1 }
 0x1ed   :  { %789 = vsyncpa [#allocation9], 1 }

</bundles_post_ra>
